<compile_context>
chip_gen: v7x
topology: tpu7x:2x2x1
jax: 0.10.0
libtpu: 0.0.40
codegen_flags: <defaults>
</compile_context>

<pallas_src>
import functools
import math

import jax
import jax.numpy as jnp
from jax import lax
from jax.experimental import pallas as pl
from jax.experimental.pallas import tpu as pltpu


def _round_up(x, m):
    return (x + m - 1) // m * m


def _vmem_capacity_bytes():
    """Per-core VMEM capacity; conservative fallback if the query fails."""
    try:
        return int(pltpu.get_tpu_info().vmem_capacity_bytes)
    except Exception:
        return 64 * 1024 * 1024


# ----------------------------- Pallas kernel --------------------------------
def _down_conv_kernel(slab_ref, w1_ref, w2_ref, b_ref, out_ref):
    """Implicit-GEMM 3x3 / stride-2 conv tile — two deep-K MXU dots.

    slab_ref: (th, W_out + 1, 6*C_in) bf16, channels = [e0,e1,e2,o0,o1,o2]
    w1_ref:   (6*C_in, C_pad) bf16   taps (ky, kx) for kx in {0, 1}
    w2_ref:   (3*C_in, C_pad) bf16   taps (ky, kx=2)
    b_ref:    (1, C_pad) f32
    out_ref:  (th * W_out, C_pad) f32, lane-dense last dim
    """
    th, wp1, c6 = slab_ref.shape
    w_out = wp1 - 1
    c3 = c6 // 2
    m, _ = out_ref.shape

    slab = slab_ref[...]
    lhs1 = slab[:, :w_out, :].reshape(m, c6)        # taps kx=0 (even), kx=1 (odd)
    lhs2 = slab[:, 1:, :c3].reshape(m, c3)          # taps kx=2 (even at x+1)

    acc = jnp.dot(lhs1, w1_ref[...], preferred_element_type=jnp.float32)
    acc = acc + jnp.dot(lhs2, w2_ref[...], preferred_element_type=jnp.float32)
    out_ref[...] = (acc + b_ref[...]).astype(out_ref.dtype)


# ------------------------------ DownConv op ---------------------------------
@functools.partial(jax.jit, static_argnames=("compute_dtype", "row_target"))
def down_conv(x_nchw, weight, bias, *, compute_dtype=jnp.bfloat16,
              row_target=512):
    """Equivalent of nn.Conv2d(C_in, C_out, 3, stride=2, padding=1)(x).

    x_nchw: (N, C_in, H, W); weight: (C_out, C_in, 3, 3); bias: (C_out,)
    returns (N, C_out, ceil(H/2), ceil(W/2)) in float32.
    """
    N, C_in, H, W = x_nchw.shape
    C_out = weight.shape[0]
    H_out = (H + 1) // 2
    W_out = (W + 1) // 2
    C_pad = _round_up(C_out, 128)                 # lane-dense output last dim
    item = jnp.dtype(compute_dtype).itemsize

    # ---- generation-aware VMEM budget --------------------------------------
    vmem_phys = _vmem_capacity_bytes()            # 128 MiB v5e/v6e, 64 MiB v7x
    vmem_limit = max(32 * 1024 * 1024,
                     min(int(vmem_phys * 0.75), 100 * 1024 * 1024))
    tile_budget = int(vmem_limit * 0.6)

    # ---- row-tile selection: big, sublane-aligned, VMEM-budgeted -----------
    sub = 8 // math.gcd(W_out, 8)                 # smallest t: (t*W_out) % 8 == 0

    def vmem_bytes(t):                            # rough double-buffered estimate
        slab_b = 2 * t * (W_out + 1) * 6 * C_in * item
        out_b = 2 * t * W_out * C_pad * 4
        w_b = 2 * 9 * C_in * C_pad * item + 2 * C_pad * 4
        lhs_b = t * W_out * 9 * C_in * item       # in-kernel reshaped LHS copies
        acc_b = t * W_out * C_pad * 4
        return slab_b + out_b + w_b + lhs_b + acc_b

    th = _round_up(max(1, row_target // max(W_out, 1)), sub)
    while th > sub and vmem_bytes(th) > tile_budget:
        th -= sub                                 # may bottom out at sub; relies
    th = min(th, _round_up(H_out, sub))           # on the raised vmem_limit then.
    # Guarantee >= 2 parallel grid blocks (v7x has 2 TensorCores per chip).
    if N == 1 and th >= H_out:
        th_half = _round_up((H_out + 1) // 2, sub)
        if th_half < H_out:
            th = th_half
    H_pad = _round_up(H_out, th)
    M_blk = th * W_out

    # ---- layout: NCHW -> NHWC (bf16), zero-pad, build the 6*C_in tap slab --
    x = jnp.transpose(x_nchw.astype(compute_dtype), (0, 2, 3, 1))
    H_p = 2 * H_pad + 2
    W_p = 2 * W_out + 2
    x_pad = jnp.pad(x, ((0, 0), (1, H_p - H - 1), (1, W_p - W - 1), (0, 0)))

    planes = []
    for ky in range(3):                           # even columns (kx = 0 / 2 taps)
        rows = x_pad[:, ky:ky + 2 * H_pad:2]      # padded rows 2y + ky
        planes.append(rows[:, :, 0::2, :])        # (N, H_pad, W_out+1, C_in)
    for ky in range(3):                           # odd columns (kx = 1 taps)
        rows = x_pad[:, ky:ky + 2 * H_pad:2]
        planes.append(rows[:, :, 1::2, :])        # (N, H_pad, W_out+1, C_in)
    slab = jnp.concatenate(planes, axis=-1)       # (N, H_pad, W_out+1, 6*C_in)

    # weights: (C_out, C_in, 3, 3) -> per-tap (C_in, C_pad) blocks stacked on K
    w_t = jnp.transpose(weight, (2, 3, 1, 0))     # (ky, kx, C_in, C_out)
    w_t = jnp.pad(w_t, ((0, 0), (0, 0), (0, 0),
                        (0, C_pad - C_out))).astype(compute_dtype)
    w1 = jnp.concatenate([w_t[0, 0], w_t[1, 0], w_t[2, 0],
                          w_t[0, 1], w_t[1, 1], w_t[2, 1]], axis=0)  # (6C_in, C_pad)
    w2 = jnp.concatenate([w_t[0, 2], w_t[1, 2], w_t[2, 2]], axis=0)  # (3C_in, C_pad)
    b_pad = jnp.pad(bias, (0, C_pad - C_out)).astype(jnp.float32).reshape(1, C_pad)

    grid = (N, H_pad // th)

    in_bytes = N * H_pad * (W_out + 1) * 6 * C_in * item
    w_bytes = 9 * C_in * C_pad * item + C_pad * 4
    out_bytes = N * H_pad * W_out * C_pad * 4

    out = pl.pallas_call(
        _down_conv_kernel,
        out_shape=jax.ShapeDtypeStruct((N, H_pad * W_out, C_pad), jnp.float32),
        grid_spec=pltpu.PrefetchScalarGridSpec(
            num_scalar_prefetch=0,
            grid=grid,
            in_specs=[
                pl.BlockSpec((None, th, W_out + 1, 6 * C_in),
                             lambda n, r: (n, r, 0, 0)),
                pl.BlockSpec((6 * C_in, C_pad), lambda n, r: (0, 0)),
                pl.BlockSpec((3 * C_in, C_pad), lambda n, r: (0, 0)),
                pl.BlockSpec((1, C_pad), lambda n, r: (0, 0)),
            ],
            out_specs=pl.BlockSpec((None, M_blk, C_pad), lambda n, r: (n, r, 0)),
        ),
        compiler_params=pltpu.CompilerParams(
            dimension_semantics=("parallel", "parallel"),
            vmem_limit_bytes=vmem_limit),
        cost_estimate=pl.CostEstimate(
            flops=2 * N * H_pad * W_out * 9 * C_in * C_pad,
            transcendentals=0,
            bytes_accessed=in_bytes + w_bytes + out_bytes),
    )(slab, w1, w2, b_pad)

    out = out.reshape(N, H_pad, W_out, C_pad)[:, :H_out, :, :C_out]
    return jnp.transpose(out, (0, 3, 1, 2))                   # NCHW


# --------------------------------- main --------------------------------------
if __name__ == "__main__":
    key = jax.random.PRNGKey(0)
    kx, kw, kb = jax.random.split(key, 3)

    N, C_in, H, W = 2, 4, 16, 16
    C_out = 8

    x = jax.random.normal(kx, (N, C_in, H, W), dtype=jnp.float32)

    # Deterministic PyTorch-style init (uniform in +-1/sqrt(fan_in)).
    fan_in = C_in * 3 * 3
    bound = 1.0 / math.sqrt(fan_in)
    weight = jax.random.uniform(kw, (C_out, C_in, 3, 3),
                                minval=-bound, maxval=bound, dtype=jnp.float32)
    bias = jax.random.uniform(kb, (C_out,), minval=-bound, maxval=bound,
                              dtype=jnp.float32)

    out = jax.block_until_ready(down_conv(x, weight, bias))

    # Reference: XLA conv on the same bf16-rounded inputs, f32 accumulation.
    xr = x.astype(jnp.bfloat16).astype(jnp.float32)
    wr = weight.astype(jnp.bfloat16).astype(jnp.float32)
    ref = lax.conv_general_dilated(
        xr, wr, window_strides=(2, 2), padding=((1, 1), (1, 1)),
        dimension_numbers=("NCHW", "OIHW", "NCHW"),
        precision=lax.Precision.HIGHEST,
    ) + bias.reshape(1, C_out, 1, 1)

    H_out, W_out = (H + 1) // 2, (W + 1) // 2
    assert out.shape == (N, C_out, H_out, W_out), out.shape
    err = float(jnp.max(jnp.abs(out - ref)))
    assert jnp.allclose(out, ref, atol=2e-3, rtol=2e-3), err
    print("KERNEL_OK")
</pallas_src>

<mosaic_0001>
module attributes {stable_mosaic.version = 11 : i64} {
  func.func @_down_conv_kernel(%arg0: i32, %arg1: i32, %arg2: memref<1x8x9x24xbf16, #tpu.memory_space<vmem>>, %arg3: memref<24x128xbf16, #tpu.memory_space<vmem>>, %arg4: memref<12x128xbf16, #tpu.memory_space<vmem>>, %arg5: memref<1x128xf32, #tpu.memory_space<vmem>>, %arg6: memref<1x64x128xf32, #tpu.memory_space<vmem>>) attributes {dimension_semantics = [#tpu.dimension_semantics<parallel>, #tpu.dimension_semantics<parallel>], iteration_bounds = array<i64: 2, 1>, scalar_prefetch = 0 : i64, scratch_operands = 0 : i64, tpu.core_type = #tpu.core_type<tc>, window_params = [{transform_indices = @transform_0, window_bounds = array<i64: 1, 8, 9, 24>}, {pipeline_mode = #tpu.pipeline_mode<synchronous>, transform_indices = @transform_1, window_bounds = array<i64: 24, 128>}, {pipeline_mode = #tpu.pipeline_mode<synchronous>, transform_indices = @transform_2, window_bounds = array<i64: 12, 128>}, {pipeline_mode = #tpu.pipeline_mode<synchronous>, transform_indices = @transform_3, window_bounds = array<i64: 1, 128>}, {transform_indices = @transform_4, window_bounds = array<i64: 1, 64, 128>}]} {
    %c0 = arith.constant 0 : index
    %c0_0 = arith.constant 0 : index
    %c0_1 = arith.constant 0 : index
    %c0_2 = arith.constant 0 : index
    %0 = vector.load %arg2[%c0, %c0_0, %c0_1, %c0_2] : memref<1x8x9x24xbf16, #tpu.memory_space<vmem>>, vector<1x8x9x24xbf16>
    %1 = vector.shape_cast %0 : vector<1x8x9x24xbf16> to vector<8x9x24xbf16>
    %2 = vector.extract_strided_slice %1 {offsets = [0, 0, 0], sizes = [8, 8, 24], strides = [1, 1, 1]} : vector<8x9x24xbf16> to vector<8x8x24xbf16>
    %3 = vector.shape_cast %2 : vector<8x8x24xbf16> to vector<64x24xbf16>
    %4 = vector.extract_strided_slice %1 {offsets = [0, 1, 0], sizes = [8, 8, 12], strides = [1, 1, 1]} : vector<8x9x24xbf16> to vector<8x8x12xbf16>
    %5 = vector.shape_cast %4 : vector<8x8x12xbf16> to vector<64x12xbf16>
    %c0_3 = arith.constant 0 : index
    %c0_4 = arith.constant 0 : index
    %6 = vector.load %arg3[%c0_3, %c0_4] : memref<24x128xbf16, #tpu.memory_space<vmem>>, vector<24x128xbf16>
    %cst = arith.constant dense<0.000000e+00> : vector<64x128xf32>
    %7 = tpu.matmul %3, %6, %cst {dimension_numbers = #tpu.dot_dimension_numbers<[1], [0], [0], [1], [0, 0, 1, 1], [], []>} : vector<64x24xbf16>, vector<24x128xbf16>, vector<64x128xf32> -> vector<64x128xf32>
    %c0_5 = arith.constant 0 : index
    %c0_6 = arith.constant 0 : index
    %8 = vector.load %arg4[%c0_5, %c0_6] : memref<12x128xbf16, #tpu.memory_space<vmem>>, vector<12x128xbf16>
    %cst_7 = arith.constant dense<0.000000e+00> : vector<64x128xf32>
    %9 = tpu.matmul %5, %8, %cst_7 {dimension_numbers = #tpu.dot_dimension_numbers<[1], [0], [0], [1], [0, 0, 1, 1], [], []>} : vector<64x12xbf16>, vector<12x128xbf16>, vector<64x128xf32> -> vector<64x128xf32>
    %10 = arith.addf %7, %9 : vector<64x128xf32>
    %c0_8 = arith.constant 0 : index
    %c0_9 = arith.constant 0 : index
    %11 = vector.load %arg5[%c0_8, %c0_9] : memref<1x128xf32, #tpu.memory_space<vmem>>, vector<1x128xf32>
    %12 = vector.broadcast %11 : vector<1x128xf32> to vector<64x128xf32>
    %13 = arith.addf %10, %12 : vector<64x128xf32>
    %c0_10 = arith.constant 0 : index
    %c0_11 = arith.constant 0 : index
    %c0_12 = arith.constant 0 : index
    %14 = vector.load %arg6[%c0_10, %c0_11, %c0_12] : memref<1x64x128xf32, #tpu.memory_space<vmem>>, vector<1x64x128xf32>
    %15 = vector.shape_cast %14 : vector<1x64x128xf32> to vector<64x128xf32>
    %16 = vector.shape_cast %13 : vector<64x128xf32> to vector<1x64x128xf32>
    tpu.vector_store %arg6[%c0_10, %c0_11, %c0_12], %16 {strides = array<i32>} : memref<1x64x128xf32, #tpu.memory_space<vmem>>, vector<1x64x128xf32>,
    return
  }
  func.func @transform_0(%arg0: i32, %arg1: i32) -> (i32, i32, i32, i32) {
    %c0_i32 = arith.constant 0 : i32
    %c0_i32_0 = arith.constant 0 : i32
    %c0_i32_1 = arith.constant 0 : i32
    return %arg0, %arg1, %c0_i32, %c0_i32_0 : i32, i32, i32, i32
  }
  func.func @transform_1(%arg0: i32, %arg1: i32) -> (i32, i32) {
    %c0_i32 = arith.constant 0 : i32
    %c0_i32_0 = arith.constant 0 : i32
    %c0_i32_1 = arith.constant 0 : i32
    return %c0_i32, %c0_i32_0 : i32, i32
  }
  func.func @transform_2(%arg0: i32, %arg1: i32) -> (i32, i32) {
    %c0_i32 = arith.constant 0 : i32
    %c0_i32_0 = arith.constant 0 : i32
    %c0_i32_1 = arith.constant 0 : i32
    return %c0_i32, %c0_i32_0 : i32, i32
  }
  func.func @transform_3(%arg0: i32, %arg1: i32) -> (i32, i32) {
    %c0_i32 = arith.constant 0 : i32
    %c0_i32_0 = arith.constant 0 : i32
    %c0_i32_1 = arith.constant 0 : i32
    return %c0_i32, %c0_i32_0 : i32, i32
  }
  func.func @transform_4(%arg0: i32, %arg1: i32) -> (i32, i32, i32) {
    %c0_i32 = arith.constant 0 : i32
    %c0_i32_0 = arith.constant 0 : i32
    return %arg0, %arg1, %c0_i32 : i32, i32, i32
  }
}

</mosaic_0001>

<bundles_post_ra>
// kernel: down_conv.1
= control target key start
LH: loop header
LB: loop body
LE: loop exit
PB: predicated region body
PF: predicated region fallthrough
CT: control target
= control target key end

     0   :  { %s856_s15 = smov 0   ;;  %s858_s16 = smov 0   ;;  %s966_s0 = inlined_call_operand.vmem [shape: bf16[2,8,9,24], index: 0, kind: input, shape index: {}]   ;;  %s967_s1 = inlined_call_operand.vmem [shape: bf16[24,128], index: 1, kind: input, shape index: {}]   ;;  %s968_s2 = inlined_call_operand.vmem [shape: bf16[12,128], index: 2, kind: input, shape index: {}]   ;;  %s969_s3 = inlined_call_operand.vmem [shape: f32[1,128], index: 3, kind: input, shape index: {}]   ;;  %s970_s4 = inlined_call_operand.vmem [shape: f32[2,64,128], index: 4, kind: output, shape index: {}]  }
   0x1   :  { %s860_s17 = smov 0  }
   0x2 LB: > { %s26_s18 = sadd.s32 1, %s825_s16  ;;  %p704_p0 = scmp.ge.s32.totalorder %s829_s17, 1  ;;  %s829_s17 = sphi %s860_s17, %s14_s17   ;;  %s825_s16 = sphi %s858_s16, %s974_s16   ;;  %s821_s15 = sphi %s856_s15, %s973_s15  }
   0x3   : > { %p28_p1 = scmp.ge.s32.totalorder %s26_s18, 2  ;;  %p184_p2 = scmp.lt.s32.totalorder %s829_s17, 3 }
   0x5   : > { %s976_s18 = smov (%p28_p1, %s26_s18), 0  ;;  %p185_p3 = pnand %p704_p0, %p184_p2 }
   0x6   : > { %v800_v0 = vld [vmem:[%s967_s1] sm:$0xff] (!%p185_p3)   ;;  %vm518_vm0 = vcmask (!%p185_p3), 1043456   ;;  %v801_v1 = vld [vmem:[%s967_s1 + $0x8] ss:$0 sps:$4 sm:$0xff] (!%p185_p3)   ;;  %vm407_vm1 = vcmask (!%p185_p3), 1045504   ;;  %p220_p4 = scmp.lt.s32.totalorder (!%p185_p3), %s821_s15, 1 }
   0x7   : > { %188 = sbr.rel (%p185_p3) target bundleno = 262 (0x106), region = 36  ;;  %754 = vmatprep.subr.bf16.mxu0 (!%p185_p3), %v800_v0  ;;  %v802_v2 = vld [vmem:[%s968_s2] sm:$0x3f] (!%p185_p3)   ;;  %v520_v3 = vsel (!%p185_p3), %vm518_vm0, %v801_v1, 0  ;;  %vm505_vm2 = vcmask (!%p185_p3), 195584   ;;  %vm394_vm5 = vcmask (!%p185_p3), 97280  }
   0x8   : > { %755 = vmatpush3.bf16.msra.mxu0 (!%p185_p3), %v800_v0  ;;  %774 = vmatprep.subr.msk.bf16.mxu1 (!%p185_p3), %vm407_vm1, %v802_v2  ;;  %v409_v4 = vsel (!%p185_p3), %vm407_vm1, %v802_v2, 0  ;;  %vm257_vm3 = vsmask.f32 (!%p185_p3), 3328  ;;  %vm258_vm4 = vsmask.f32 (!%p185_p3), 7440 }
   0x9   : > { %775 = vmatprep.subr.msk.bf16.mxu0 (!%p185_p3), %vm518_vm0, %v801_v1  ;;  %745 = vmatpush3.bf16.msra.mxu1 (!%p185_p3), %v409_v4  ;;  %vm904_vm6 = vmor (!%p185_p3), %vm257_vm3, %vm258_vm4 }
   0xc   : > { %757 = vmatpush3.bf16.msra.mxu0 (!%p185_p3), %v520_v3 }
   0xe   : > { %s978_s15 = smov (!%p220_p4, %s821_s15), 1 }
   0xf   : > { %s731_s25 = sshll.u32 %s978_s15, 6 }
  0x10   : > { %s891_s28 = scalar_lea.vmem %s966_s0, %s731_s25  ;;  %s947_s7 = scalar_lea.vmem %s970_s4, %s731_s25 }
  0x11   : > { %v241_v5 = vld [vmem:[%s891_s28] sm:$0xf]  ;;  %v243_v6 = vld [vmem:[%s891_s28 + $0x8] sm:$0xf]  ;;  %v245_v7 = vld [vmem:[%s891_s28 + $0x10] sm:$0xf] }
  0x12   : > { %v261_v8 = vshrl.u32 %v241_v5, 16  ;;  %v264_v9 = vshll.u32 %v241_v5, 16  ;;  %v275_v10 = vshrl.u32 %v243_v6, 16  ;;  %v278_v11 = vshll.u32 %v243_v6, 16  ;;  %v247_v12 = vld [vmem:[%s891_s28 + $0x18] sm:$0xf] }
  0x13   : > { %v718_v13 = vcombine.low %v241_v5, %v243_v6  ;;  %v289_v14 = vshrl.u32 %v245_v7, 16  ;;  %v292_v15 = vshll.u32 %v245_v7, 16  ;;  %v303_v16 = vshrl.u32 %v247_v12, 16  ;;  %v242_v17 = vld [vmem:[%s891_s28 + $0x4] sm:$0x1] }
  0x14   : > { %v263_v18 = vrot.slane %v261_v8, 4  ;;  %v266_v19 = vrot.slane %v264_v9, 5  ;;  %v277_v20 = vrot.slane %v275_v10, 4  ;;  %v280_v21 = vrot.slane %v278_v11, 5  ;;  %v244_v22 = vld [vmem:[%s891_s28 + $0xc] sm:$0x1] }
  0x15   : > { %758 = vmatprep.mubr.msk.bf16.mxu0 %vm505_vm2, %v718_v13  ;;  %v291_v23 = vrot.slane %v289_v14, 4  ;;  %v294_v24 = vrot.slane %v292_v15, 5  ;;  %v305_v25 = vrot.slane %v303_v16, 4  ;;  %v306_v26 = vshll.u32 %v247_v12, 16  ;;  %v246_v27 = vld [vmem:[%s891_s28 + $0x14] sm:$0x1] }
  0x16   : > { %v719_v28 = vcombine.low %v245_v7, %v247_v12  ;;  %v267_v29 = vor.u32 %v266_v19, %v263_v18  ;;  %v270_v30 = vshll.u32 %v242_v17, 16  ;;  %v281_v31 = vor.u32 %v280_v21, %v277_v20  ;;  %v248_v32 = vld [vmem:[%s891_s28 + $0x1c] sm:$0x1]  ;;  %v249_v38 = vld [vmem:[%s891_s28 + $0x20] sm:$0xf] }
  0x17   : > { %v308_v33 = vrot.slane %v306_v26, 5  ;;  %v284_v35 = vshll.u32 %v244_v22, 16  ;;  %v295_v36 = vor.u32 %v294_v24, %v291_v23  ;;  %v298_v37 = vshll.u32 %v246_v27, 16  ;;  %v251_v43 = vld [vmem:[%s891_s28 + $0x28] sm:$0xf] }
  0x18   : > { %759 = vmatmul.mubr.msk.bf16.vlgmr.msra.gmra.mrb[0].mxu0 %vm505_vm2, %v719_v28  ;;  %v268_v39 = vrot.slane %v267_v29, 4  ;;  %v272_v40 = vrot.slane %v270_v30, 5  ;;  %v282_v41 = vrot.slane %v281_v31, 4  ;;  %v312_v42 = vshll.u32 %v248_v32, 16  ;;  %v253_v52 = vld [vmem:[%s891_s28 + $0x30] sm:$0xf] }
  0x19   : > { %v286_v44 = vrot.slane %v284_v35, 5  ;;  %v296_v45 = vrot.slane %v295_v36, 4  ;;  %v300_v46 = vrot.slane %v298_v37, 5  ;;  %v309_v47 = vor.u32 %v308_v33, %v305_v25  ;;  %v255_v57 = vld [vmem:[%s891_s28 + $0x38] sm:$0xf] }
  0x1a   : > { %v273_v48 = vsel %vm904_vm6, %v268_v39, %v272_v40  ;;  %v314_v49 = vrot.slane %v312_v42, 5  ;;  %v317_v50 = vshrl.u32 %v249_v38, 16  ;;  %v320_v51 = vshll.u32 %v249_v38, 16  ;;  %v250_v2 = vld [vmem:[%s891_s28 + $0x24] sm:$0x1] }
  0x1b   : > { %v287_v53 = vsel %vm904_vm6, %v282_v41, %v286_v44  ;;  %v301_v54 = vsel %vm904_vm6, %v296_v45, %v300_v46  ;;  %v310_v55 = vrot.slane %v309_v47, 4  ;;  %v331_v56 = vshrl.u32 %v251_v43, 16  ;;  %v252_v3 = vld [vmem:[%s891_s28 + $0x2c] sm:$0x1]  ;;  %v254_v8 = vld [vmem:[%s891_s28 + $0x34] sm:$0x1] }
  0x1c   : > { %v709_v58 = vcombine.low %v273_v48, %v287_v53  ;;  %v319_v59 = vrot.slane %v317_v50, 4  ;;  %v322_v60 = vrot.slane %v320_v51, 5  ;;  %v334_v61 = vshll.u32 %v251_v43, 16  ;;  %v256_v13 = vld [vmem:[%s891_s28 + $0x3c] sm:$0x1] }
  0x1d   : > { %v315_v62 = vsel %vm904_vm6, %v310_v55, %v314_v49  ;;  %v333_v63 = vrot.slane %v331_v56, 4  ;;  %v720_v0 = vcombine.low %v249_v38, %v251_v43  ;;  %v345_v1 = vshrl.u32 %v253_v52, 16  ;;  %v728_v44 = vld [vmem:[%s969_s3] ss:$0 sm:$0xff] }
  0x1e   : > { %746 = vmatprep.mubr.msk.bf16.mxu1 %vm394_vm5, %v709_v58  ;;  %v710_v4 = vcombine.low %v301_v54, %v315_v62  ;;  %v336_v5 = vrot.slane %v334_v61, 5  ;;  %v348_v6 = vshll.u32 %v253_v52, 16  ;;  %v359_v7 = vshrl.u32 %v255_v57, 16 }
  0x1f   : > { %762 = vmatprep.mubr.msk.bf16.mxu0 %vm505_vm2, %v720_v0  ;;  %v347_v9 = vrot.slane %v345_v1, 4  ;;  %v362_v10 = vshll.u32 %v255_v57, 16  ;;  %v721_v11 = vcombine.low %v253_v52, %v255_v57  ;;  %v323_v12 = vor.u32 %v322_v60, %v319_v59 }
  0x20   : > { %747 = vmatmul.mubr.msk.bf16.vlgmr.msra.gmra.mrb[0].mxu1 %vm394_vm5, %v710_v4  ;;  %v350_v14 = vrot.slane %v348_v6, 5  ;;  %v361_v15 = vrot.slane %v359_v7, 4  ;;  %v326_v16 = vshll.u32 %v250_v2, 16  ;;  %v337_v17 = vor.u32 %v336_v5, %v333_v63 }
  0x21   : > { %v364_v18 = vrot.slane %v362_v10, 5  ;;  %763 = vmatmul.mubr.msk.bf16.gmra.mrb[4].mxu0 %vm505_vm2, %v721_v11  ;;  %v324_v19 = vrot.slane %v323_v12, 4  ;;  %v340_v20 = vshll.u32 %v252_v3, 16  ;;  %v354_v21 = vshll.u32 %v254_v8, 16 }
  0x22   : > { %v328_v22 = vrot.slane %v326_v16, 5  ;;  %v338_v23 = vrot.slane %v337_v17, 4  ;;  %v351_v24 = vor.u32 %v350_v14, %v347_v9  ;;  %v368_v25 = vshll.u32 %v256_v13, 16 }
  0x23   : > { %v342_v26 = vrot.slane %v340_v20, 5  ;;  %v356_v27 = vrot.slane %v354_v21, 5  ;;  %v365_v28 = vor.u32 %v364_v18, %v361_v15 }
  0x24   : > { %v329_v29 = vsel %vm904_vm6, %v324_v19, %v328_v22  ;;  %v352_v30 = vrot.slane %v351_v24, 4  ;;  %v370_v31 = vrot.slane %v368_v25, 5 }
  0x25   : > { %v343_v32 = vsel %vm904_vm6, %v338_v23, %v342_v26  ;;  %v366_v33 = vrot.slane %v365_v28, 4 }
  0x26   : > { %v711_v35 = vcombine.low %v329_v29, %v343_v32  ;;  %v357_v36 = vsel %vm904_vm6, %v352_v30, %v356_v27 }
  0x27   : > { %v371_v37 = vsel %vm904_vm6, %v366_v33, %v370_v31 }
  0x28   : > { %750 = vmatprep.mubr.msk.bf16.mxu1 %vm394_vm5, %v711_v35  ;;  %v712_v38 = vcombine.low %v357_v36, %v371_v37 }
  0x2a   : > { %751 = vmatmul.mubr.msk.bf16.gmra.mrb[4].mxu1 %vm394_vm5, %v712_v38 }
  0xeb   : > { %v760_v39 = vpop.f32.mrb[0].mxu0 }
  0xec   : > { %v556_v40 = vpop.f32.mrb[1].mxu0 }
  0xed   : > { %v761_v41 = vpop.f32.mrb[2].mxu0 }
  0xee   : > { %v559_v42 = vpop.f32.mrb[3].mxu0 }
  0xf3   : > { %v748_v43 = vpop.f32.mrb[0].mxu1 }
  0xf4   : > { %v565_v45 = vadd.f32 %v760_v39, %v748_v43  ;;  %v445_v46 = vpop.f32.mrb[1].mxu1  ;;  %v764_v47 = vpop.f32.mrb[4].mxu0 }
  0xf5   : > { %v557_v34 = vadd.f32 %v556_v40, %v445_v46  ;;  %v749_v48 = vpop.f32.mrb[2].mxu1  ;;  %v572_v49 = vpop.f32.mrb[5].mxu0 }
  0xf6   : > { %v596_v50 = vadd.f32 %v728_v44, %v565_v45  ;;  %v568_v51 = vadd.f32 %v761_v41, %v749_v48  ;;  %v448_v52 = vpop.f32.mrb[3].mxu1  ;;  %v765_v53 = vpop.f32.mrb[6].mxu0 }
  0xf7   : > { %v594_v54 = vadd.f32 %v728_v44, %v557_v34  ;;  %v560_v55 = vadd.f32 %v559_v42, %v448_v52  ;;  %v575_v56 = vpop.f32.mrb[7].mxu0 }
  0xf8   : > { %604 = vst [vmem:[%s947_s7 + $0x10] sm:$0xff] %v596_v50  ;;  %v597_v57 = vadd.f32 %v728_v44, %v568_v51 }
  0xf9   : > { %602 = vst [vmem:[%s947_s7] sm:$0xff] %v594_v54  ;;  %v595_v58 = vadd.f32 %v728_v44, %v560_v55 }
  0xfa   : > { %605 = vst [vmem:[%s947_s7 + $0x18] sm:$0xff] %v597_v57 }
  0xfb   : > { %603 = vst [vmem:[%s947_s7 + $0x8] sm:$0xff] %v595_v58 }
  0xfd   : > { %v752_v59 = vpop.f32.mrb[4].mxu1 }
  0xfe   : > { %v581_v60 = vadd.f32 %v764_v47, %v752_v59  ;;  %v461_v61 = vpop.f32.mrb[5].mxu1 }
  0xff   : > { %v573_v62 = vadd.f32 %v572_v49, %v461_v61  ;;  %v753_v63 = vpop.f32.mrb[6].mxu1 }
 0x100   : > { %v600_v0 = vadd.f32 %v728_v44, %v581_v60  ;;  %v584_v1 = vadd.f32 %v765_v53, %v753_v63  ;;  %v464_v2 = vpop.f32.mrb[7].mxu1 }
 0x101   : > { %v598_v3 = vadd.f32 %v728_v44, %v573_v62  ;;  %v576_v4 = vadd.f32 %v575_v56, %v464_v2 }
 0x102   : > { %608 = vst [vmem:[%s947_s7 + $0x30] sm:$0xff] %v600_v0  ;;  %v601_v5 = vadd.f32 %v728_v44, %v584_v1 }
 0x103   : > { %606 = vst [vmem:[%s947_s7 + $0x20] sm:$0xff] %v598_v3  ;;  %v599_v6 = vadd.f32 %v728_v44, %v576_v4 }
 0x104   : > { %609 = vst [vmem:[%s947_s7 + $0x38] sm:$0xff] %v601_v5 }
 0x105   : > { %607 = vst [vmem:[%s947_s7 + $0x28] sm:$0xff] %v599_v6 }
 0x106 PF: > { %s14_s17 = sadd.s32 1, %s829_s17   ;;  %s973_s15 = smov %s825_s16 }
 0x107   : > { %p11_p5 = scmp.ge.s32.totalorder %s14_s17, 4   ;;  %s974_s16 = smov %s976_s18 }
 0x109   :  { %13 = sbr.rel (!%p11_p5) target bundleno = 2 (0x2), region = 66 }

</bundles_post_ra>
